<compile_context>
chip_gen: v7x
topology: tpu7x:2x2x1
jax: 0.10.0
libtpu: 0.0.40
codegen_flags: <defaults>
</compile_context>

<pallas_src>
import jax
import jax.numpy as jnp
from jax.experimental import pallas as pl
from jax.experimental.pallas import tpu as pltpu


def _patch_mask_kernel(x_ref, m_ref, o_ref):
    # x_ref: (1, C, T) block of the flattened (B, C, H*W) image
    # m_ref: (1, 1, T) int8 keep mask (1 keep, 0 zero), shared across channels
    m = m_ref[...].astype(x_ref.dtype)   # cast once; broadcasts over C
    o_ref[...] = x_ref[...] * m          # single VPU multiply (no where/select)


def _pick_pixel_tile(num_px, channels, itemsize, max_block_bytes=1 << 20):
    """Largest lane-dense pixel tile whose (C, tile) x-block fits the budget."""
    if channels * num_px * itemsize <= max_block_bytes:
        return num_px                                    # full extent (always legal)
    tile = (max_block_bytes // (channels * itemsize)) // 1024 * 1024
    return max(tile, 1024)                               # multiple of 8*128


def patch_mask_pallas(x, keep_mask_pixels):
    """x: (B, C, H, W); keep_mask_pixels: (B, H, W), 1 = keep, 0 = mask."""
    B, C, H, W = x.shape
    num_px = H * W
    x_flat = x.reshape(B, C, num_px)
    m_flat = keep_mask_pixels.astype(jnp.int8).reshape(B, 1, num_px)

    tile = _pick_pixel_tile(num_px, C, x.dtype.itemsize)
    grid = (B, pl.cdiv(num_px, tile))

    # Note: input_output_aliases={0: 0} could donate x's buffer for in-place
    # masking; left off here so the caller can keep using x afterwards.
    out = pl.pallas_call(
        _patch_mask_kernel,
        out_shape=jax.ShapeDtypeStruct((B, C, num_px), x.dtype),
        grid_spec=pltpu.PrefetchScalarGridSpec(
            num_scalar_prefetch=0,
            grid=grid,
            in_specs=[
                pl.BlockSpec((1, C, tile), lambda b, t: (b, 0, t)),
                pl.BlockSpec((1, 1, tile), lambda b, t: (b, 0, t)),
            ],
            out_specs=pl.BlockSpec((1, C, tile), lambda b, t: (b, 0, t)),
        ),
        compiler_params=pltpu.CompilerParams(
            dimension_semantics=("parallel", "parallel"),
            vmem_limit_bytes=32 << 20,
        ),
    )(x_flat, m_flat)
    return out.reshape(B, C, H, W)


def make_keep_mask(key, batch_size, height, width, patch_size, mask_ratio):
    """Per-patch Bernoulli(mask_ratio) coin flips expanded to a per-pixel int8
    keep mask (1 = keep, 0 = zero). Matches the PyTorch loop: one coin per
    (batch, patch_row, patch_col); a masked patch is zeroed across all channels.
    """
    n_h = -(-height // patch_size)   # ceil-div, same patch grid as range(0, H, P)
    n_w = -(-width // patch_size)
    masked_patches = jax.random.bernoulli(
        key, p=mask_ratio, shape=(batch_size, n_h, n_w))
    keep_patches = (~masked_patches).astype(jnp.int8)
    keep_pixels = jnp.repeat(jnp.repeat(keep_patches, patch_size, axis=1),
                             patch_size, axis=2)
    return keep_pixels[:, :height, :width]


class PatchMaskPallas:
    def __init__(self, patch_size=16, mask_ratio=0.35):
        self.patch_size = patch_size
        self.mask_ratio = mask_ratio

    def __call__(self, x, rng_key):
        B, C, H, W = x.shape
        keep = make_keep_mask(rng_key, B, H, W, self.patch_size, self.mask_ratio)
        return patch_mask_pallas(x, keep)


if __name__ == "__main__":
    key = jax.random.PRNGKey(0)
    k_x, k_mask = jax.random.split(key)

    # Small shapes consistent with the module: B=2, C=4, H=W=16, patch_size=8.
    B, C, H, W = 2, 4, 16, 16
    patch_size, mask_ratio = 8, 0.35

    x = jax.random.normal(k_x, (B, C, H, W), dtype=jnp.float32)

    module = PatchMaskPallas(patch_size=patch_size, mask_ratio=mask_ratio)
    out = module(x, k_mask)
    out = jax.block_until_ready(out)

    # Pure-JAX reference using the SAME coin flips.
    keep = make_keep_mask(k_mask, B, H, W, patch_size, mask_ratio)
    ref = x * keep[:, None, :, :].astype(x.dtype)

    assert out.shape == x.shape and out.dtype == x.dtype
    assert jnp.allclose(out, ref), "mismatch vs reference"

    print("KERNEL_OK")
</pallas_src>

<mosaic_0001>
module attributes {stable_mosaic.version = 11 : i64} {
  func.func @_patch_mask_kernel(%arg0: i32, %arg1: i32, %arg2: memref<1x4x256xf32, #tpu.memory_space<vmem>>, %arg3: memref<1x1x256xi8, #tpu.memory_space<vmem>>, %arg4: memref<1x4x256xf32, #tpu.memory_space<vmem>>) attributes {dimension_semantics = [#tpu.dimension_semantics<parallel>, #tpu.dimension_semantics<parallel>], iteration_bounds = array<i64: 2, 1>, scalar_prefetch = 0 : i64, scratch_operands = 0 : i64, tpu.core_type = #tpu.core_type<tc>, window_params = [{transform_indices = @transform_0, window_bounds = array<i64: 1, 4, 256>}, {transform_indices = @transform_1, window_bounds = array<i64: 1, 1, 256>}, {transform_indices = @transform_2, window_bounds = array<i64: 1, 4, 256>}]} {
    %c0 = arith.constant 0 : index
    %c0_0 = arith.constant 0 : index
    %c0_1 = arith.constant 0 : index
    %0 = vector.load %arg3[%c0, %c0_0, %c0_1] : memref<1x1x256xi8, #tpu.memory_space<vmem>>, vector<1x1x256xi8>
    %1 = arith.sitofp %0 : vector<1x1x256xi8> to vector<1x1x256xf32>
    %c0_2 = arith.constant 0 : index
    %c0_3 = arith.constant 0 : index
    %c0_4 = arith.constant 0 : index
    %2 = vector.load %arg2[%c0_2, %c0_3, %c0_4] : memref<1x4x256xf32, #tpu.memory_space<vmem>>, vector<1x4x256xf32>
    %3 = vector.broadcast %1 : vector<1x1x256xf32> to vector<1x4x256xf32>
    %4 = arith.mulf %2, %3 : vector<1x4x256xf32>
    %c0_5 = arith.constant 0 : index
    %c0_6 = arith.constant 0 : index
    %c0_7 = arith.constant 0 : index
    %5 = vector.load %arg4[%c0_5, %c0_6, %c0_7] : memref<1x4x256xf32, #tpu.memory_space<vmem>>, vector<1x4x256xf32>
    tpu.vector_store %arg4[%c0_5, %c0_6, %c0_7], %4 {strides = array<i32>} : memref<1x4x256xf32, #tpu.memory_space<vmem>>, vector<1x4x256xf32>,
    return
  }
  func.func @transform_0(%arg0: i32, %arg1: i32) -> (i32, i32, i32) {
    %c0_i32 = arith.constant 0 : i32
    %c0_i32_0 = arith.constant 0 : i32
    return %arg0, %c0_i32, %arg1 : i32, i32, i32
  }
  func.func @transform_1(%arg0: i32, %arg1: i32) -> (i32, i32, i32) {
    %c0_i32 = arith.constant 0 : i32
    %c0_i32_0 = arith.constant 0 : i32
    return %arg0, %c0_i32, %arg1 : i32, i32, i32
  }
  func.func @transform_2(%arg0: i32, %arg1: i32) -> (i32, i32, i32) {
    %c0_i32 = arith.constant 0 : i32
    %c0_i32_0 = arith.constant 0 : i32
    return %arg0, %c0_i32, %arg1 : i32, i32, i32
  }
}

</mosaic_0001>

<bundles_post_ra>
// kernel: tpu_custom_call.1
= control target key start
LH: loop header
LB: loop body
LE: loop exit
PB: predicated region body
PF: predicated region fallthrough
CT: control target
= control target key end

     0   :  { %7 = vsyncpa [#allocation3], 0  ;;  %s746_s0 = inlined_call_operand.hbm [shape: f32[2,4,256], index: 0, kind: input, shape index: {}]   ;;  %s747_s1 = inlined_call_operand.vmem [shape: s8[2,1,256], index: 1, kind: input, shape index: {}]   ;;  %s748_s2 = inlined_call_operand.hbm [shape: f32[2,4,256], index: 2, kind: output, shape index: {}]  }
   0x1   :  { %9 = vsyncpa [#allocation3 + $0x1], 0 }
   0x2   :  { %10 = vsyncpa [#allocation4], 0 }
   0x3   :  { %12 = vsyncpa [#allocation4 + $0x1], 0  ;;  %s569_s9 = smov 0   ;;  %s571_s10 = smov 0  }
   0x4   :  { %s573_s11 = smov 0   ;;  %s575_s12 = smov 0  }
   0x5   :  { %s577_s13 = smov 0   ;;  %s579_s14 = smov 0  }
   0x6 LB: > { %s358_s15 = sadd.s32 4294967295, %s550_s14   ;;  %s359_s16 = sadd.s32 4294967294, %s550_s14   ;;  %s550_s14 = sphi %s579_s14, %s18_s14   ;;  %s546_s13 = sphi %s577_s13, %s764_s13   ;;  %s542_s12 = sphi %s575_s12, %s763_s12   ;;  %s538_s11 = sphi %s573_s11, %s762_s11   ;;  %s534_s10 = sphi %s571_s10, %s761_s10   ;;  %s530_s9 = sphi %s569_s9, %s760_s9  }
   0x7   : > { %s30_s17 = sadd.s32 1, %s546_s13  ;;  %s39_s18 = sadd.s32 1, %s538_s11 }
   0x8   : > { %p32_p0 = scmp.ge.s32.totalorder %s30_s17, 2  ;;  %p46_p1 = scmp.ne.s32.totalorder %s538_s11, %s534_s10 }
   0x9   : > { %p47_p2 = scmp.eq.s32.totalorder %s550_s14, 0  ;;  %p52_p3 = scmp.ne.s32.totalorder %s534_s10, %s530_s9 }
   0xa   : > { %s766_s17 = smov (%p32_p0, %s30_s17), 0  ;;  %p53_p5 = scmp.eq.s32.totalorder %s358_s15, 0 }
   0xb   : > { %p610_p4 = por %p47_p2, %p46_p1  ;;  %s34_s20 = ssub.s32 %s546_s13, %s766_s17 }
   0xc   : > { %p106_p6 = scmp.eq.s32.totalorder %s358_s15, 1  ;;  %p37_p7 = scmp.eq.s32.totalorder %s34_s20, 0 }
   0xd   : > { %p616_p8 = por %p53_p5, %p52_p3  ;;  %p112_p10 = scmp.eq.s32.totalorder %s359_s16, 1 }
   0xe   : > { %p620_p9 = por %p106_p6, %p46_p1  ;;  %p388_p13 = scmp.lt.s32.totalorder %s550_s14, 2 }
   0xf   : > { %s625_s23 = scalar_select %p37_p7, %s538_s11, %s39_s18  }
  0x10   : > { %s752_s22 = scalar_select %p620_p9, 1, 0 }
  0x11   : > { %p627_p11 = por %p112_p10, %p52_p3  ;;  %s132_s25 = sand.u32 1, %s538_s11  }
  0x12   : > { %s362_s26 = sshll.u32 %s132_s25, 3  ;;  %s374_s27 = sshll.u32 %s546_s13, 7 }
  0x13   : > { %s753_s24 = scalar_select %p627_p11, 1, 0 }
  0x14   : > { %s638_s30 = scalar_lea.hbm %s746_s0, %s374_s27  ;;  %s136_s3 = scalar_lea.vmem [#allocation2], %s362_s26 }
  0x15   : > { %s146_s4 = sshll.u32 %s136_s3, 4  ;;  %p644_p0 = pnand %p388_p13, %p610_p4  ;;  %s640_s4 = int_to_ptr.vmem [resolvable:$true] %s146_s4 }
  0x16   : > { %s133_s6 = scalar_lea.sflag [#allocation3], %s132_s25  ;;  %s438_s7 = scalar_lea.hbm %s638_s30, 128 }
  0x17   : > { %p439_p3 = scmp.ne.s32.totalorder %s638_s30, %s438_s7  ;;  %p440_p5 = pneg %p644_p0 }
  0x18   : > { %s443_s16 = scalar_lea.hbm %s746_s0, 256  ;;  %p444_p4 = scmp.lt.u32.totalorder %s638_s30, %s746_s0 }
  0x19   : > { %p441_p6 = pnand %p440_p5, %p439_p3  ;;  %p445_p10 = scmp.lt.u32.totalorder %s443_s16, %s438_s7 }
  0x1a   : > { %p447_p12 = scmp.lt.u32.totalorder %s438_s7, %s638_s30 }
  0x1b   : > { %p442_p7 = pneg %p441_p6  ;;  %p446_p13 = por %p445_p10, %p444_p4 }
  0x1d   : > { %p448_p1 = por %p447_p12, %p446_p13 }
  0x1f   : > { %p449_p2 = pnand %p448_p1, %p442_p7 }
  0x21   : > { %452 = shalt.err (!%p449_p2)
}
  0x22   : > { %s453_s20 = scalar_lea.vmem %s640_s4, 128  ;;  %s552_s25 = smov [#allocation2]  }
  0x23   : > { %p454_p3 = scmp.ne.s32.totalorder %s640_s4, %s453_s20  ;;  %s458_s26 = sshll.u32 %s552_s25, 4  ;;  %s459_s26 = int_to_ptr.vmem [resolvable:$false] %s458_s26 }
  0x24   : > { %s460_s27 = scalar_lea.vmem %s459_s26, 256  ;;  %p461_p9 = scmp.lt.s32.totalorder %s640_s4, %s459_s26 }
  0x25   : > { %p456_p6 = pnand %p454_p3, %p440_p5  ;;  %p462_p4 = scmp.lt.s32.totalorder %s460_s27, %s453_s20 }
  0x27   : > { %p457_p11 = pneg %p456_p6  ;;  %p463_p10 = por %p462_p4, %p461_p9 }
  0x29   : > { %p464_p12 = pnand %p463_p10, %p457_p11 }
  0x2b   : > { %467 = shalt.err (!%p464_p12)
}
  0x2c   : > { %383 = dma.hbm_to_vmem [thread:$0]  (!%p644_p0), %s638_s30, 128, %s640_s4, %s133_s6  }
  0x2d   : > { %p755_p1 = scmp.lt.s32.totalorder %s550_s14, 3  ;;  %p756_p2 = scmp.ge.s32.totalorder %s550_s14, 1 }
  0x2f   : > { %p164_p5 = pnand %p756_p2, %p755_p1 }
  0x30   : > { %s680_s28 = sand.u32 (!%p164_p5), 1, %s534_s10  }
  0x31   : > { %167 = sbr.rel (%p164_p5) target bundleno = 90 (0x5a), region = 28  ;;  %s366_s29 = sshll.u32 (!%p164_p5), %s680_s28, 3 }
  0x32   : > { %s170_s3 = scalar_lea.sflag (!%p164_p5), [#allocation3], %s680_s28  ;;  %s173_s7 = scalar_lea.vmem (!%p164_p5), [#allocation2], %s366_s29 }
  0x38   : > { %521 = dma.done.wait (%p616_p8), %s170_s3, 128  }
  0x39   : > { %523 = vsyncadd (%p616_p8), %s170_s3, 4294967168  ;;  %p204_p9 = scmp.lt.s32.totalorder %s542_s12, 1  ;;  %v218_v0 = vlaneseq  ;;  %v216_v11 = vld [vmem:[%s173_s7] sm:$0xff]  ;;  %s201_s21 = scalar_lea.vmem [#allocation5], %s366_s29 }
  0x3a   : > { %s259_s15 = sshll.u32 %s201_s21, 4  ;;  %s375_s16 = sshll.u32 %s542_s12, 7  ;;  %s694_s15 = int_to_ptr.vmem [resolvable:$true] %s259_s15 }
  0x3b   : > { %s205_s30 = scalar_select %p204_p9, %s542_s12, 1  ;;  %v219_v1 = vshrl.u32 %v218_v0, 7 }
  0x3c   : > { %s699_s20 = scalar_lea.hbm %s748_s2, %s375_s16  ;;  %s243_s25 = scalar_lea.sflag [#allocation4], %s680_s28 }
  0x3d   : > { %s368_s4 = sshll.u32 %s205_s30, 1  ;;  %v220_v4 = vsub.s32 0, %v219_v1  ;;  %v224_v5 = vsub.s32 4, %v219_v1  ;;  %s468_s26 = scalar_lea.vmem %s694_s15, 128 }
  0x3e   : > { %s210_s8 = scalar_lea.vmem %s747_s1, %s368_s4  ;;  %p469_p8 = scmp.ne.s32.totalorder %s694_s15, %s468_s26 }
  0x3f   : > { %v213_v2 = vld [vmem:[%s210_s8] sm:$0x3]  ;;  %p757_p11 = scmp.ne.s32.totalorder %s752_s22, 0  ;;  %s553_s12 = smov [#allocation5]  }
  0x40   : > { %v214_v3 = vunpack.c.0.s8 %v213_v2  ;;  %s472_s27 = sshll.u32 %s553_s12, 4  ;;  %s473_s27 = int_to_ptr.vmem [resolvable:$false] %s472_s27 }
  0x41   : > { %p470_p0 = pnand %p469_p8, %p757_p11  ;;  %s474_s29 = scalar_lea.vmem %s473_s27, 256 }
  0x42   : > { %v215_v6 = vcvt.s32.f32 %v214_v3  ;;  %p475_p13 = scmp.lt.s32.totalorder %s694_s15, %s473_s27  ;;  %p476_p3 = scmp.lt.s32.totalorder %s474_s29, %s468_s26 }
  0x43   : > { %p471_p7 = pneg %p470_p0 }
  0x44   : > { %v221_v7 = vrot.slane %v215_v6, %v220_v4  ;;  %v225_v8 = vrot.slane %v215_v6, %v224_v5  ;;  %p477_p6 = por %p476_p3, %p475_p13 }
  0x46   : > { %v231_v9 = vrot.slane %v221_v7, %v220_v4  ;;  %v235_v10 = vrot.slane %v225_v8, %v220_v4  ;;  %p478_p4 = pnand %p477_p6, %p471_p7 }
  0x48   : > { %v238_v12 = vcombine.low %v231_v9, %v235_v10 }
  0x4a   : > { %v240_v13 = vmul.f32 %v238_v12, %v216_v11 }
  0x4c   : > { %241 = vst [vmem:[%s201_s21] sm:$0xff] %v240_v13 }
  0x4d   : > { %481 = shalt.err (!%p478_p4)
}
  0x4e   : > { %s482_s28 = scalar_lea.hbm %s699_s20, 128  ;;  %s486_s30 = scalar_lea.hbm %s748_s2, 256 }
  0x4f   : > { %p483_p10 = scmp.ne.s32.totalorder %s699_s20, %s482_s28  ;;  %p487_p2 = scmp.lt.u32.totalorder %s699_s20, %s748_s2 }
  0x50   : > { %p488_p5 = scmp.lt.u32.totalorder %s486_s30, %s482_s28  ;;  %p490_p8 = scmp.lt.u32.totalorder %s482_s28, %s699_s20 }
  0x51   : > { %p484_p12 = pnand %p483_p10, %p757_p11 }
  0x52   : > { %p489_p9 = por %p488_p5, %p487_p2 }
  0x53   : > { %p485_p1 = pneg %p484_p12 }
  0x54   : > { %p491_p0 = por %p490_p8, %p489_p9 }
  0x56   : > { %p492_p7 = pnand %p491_p0, %p485_p1 }
  0x58   : > { %495 = shalt.err (!%p492_p7)
}
  0x59   : > { %378 = dma.vmem_to_hbm [thread:$0]  (%p757_p11), %s694_s15, 128, %s699_s20, %s243_s25  }
  0x5a PF: > { %s271_s6 = sand.u32 1, %s530_s9   ;;  %p758_p13 = scmp.ne.s32.totalorder %s753_s24, 0 }
  0x5b   : > { %p759_p3 = scmp.ge.s32.totalorder %s550_s14, 2  ;;  %s272_s8 = scalar_lea.sflag [#allocation4], %s271_s6 }
  0x5d   : > { %p385_p6 = pnand %p759_p3, %p758_p13 }
  0x5f   : > { %525 = dma.done.wait (!%p385_p6), %s272_s8, 128  }
  0x60   : > { %527 = vsyncadd (!%p385_p6), %s272_s8, 4294967168  ;;  %s18_s14 = sadd.s32 1, %s550_s14   ;;  %s760_s9 = smov %s534_s10 }
  0x61   : > { %p15_p4 = scmp.ge.s32.totalorder %s18_s14, 4   ;;  %s761_s10 = smov %s538_s11 }
  0x62   : > { %s762_s11 = smov %s625_s23  ;;  %s763_s12 = smov %s546_s13 }
  0x63   : > { %s764_s13 = smov %s766_s17  ;;  %17 = sbr.rel (!%p15_p4) target bundleno = 6 (0x6), region = 76 }
  0x6a   :  { %277 = vsyncpa [#allocation3], 1 }
  0x6b   :  { %279 = vsyncpa [#allocation3 + $0x1], 1 }
  0x6c   :  { %280 = vsyncpa [#allocation4], 1 }
  0x6d   :  { %282 = vsyncpa [#allocation4 + $0x1], 1 }

</bundles_post_ra>
